<compile_context>
chip_gen: v7x
topology: tpu7x:2x2x1
jax: 0.10.0
libtpu: 0.0.40
codegen_flags: <defaults>
</compile_context>

<pallas_src>
import functools

import jax
import jax.numpy as jnp
from jax.experimental import pallas as pl
from jax.experimental.pallas import tpu as pltpu

_MIB = 1024 * 1024


def _round_up(x, m):
    return ((x + m - 1) // m) * m


def _vmem_limit_bytes():
    """Generation-aware scoped-VMEM limit: half of physical, clamped to [32, 64] MiB."""
    try:
        phys = int(pltpu.get_tpu_info().vmem_capacity_bytes)
    except Exception:
        return 32 * _MIB
    return int(min(max(phys // 2, 32 * _MIB), 64 * _MIB))


def _focal_loss_kernel(logits_ref, target_ref, out_ref, *,
                       gamma, label_smoothing, n_rows, per_row):
    x = logits_ref[...].astype(jnp.float32)              # (T, C); bf16 upcast in vregs
    tile_n, num_classes = x.shape

    # Targets arrive lane-dense as a (1, 1, T) int32 block (one contiguous DMA, no
    # lane padding in VMEM).  Move them to a (T, 1) column through the idle XLU.
    t_col = jnp.transpose(target_ref[0], (1, 0))          # (1, T) -> (T, 1)

    # Numerically-stable log-sum-exp along the class (lane) axis.
    m = jnp.max(x, axis=-1, keepdims=True)
    shifted = x - m
    lse = jnp.log(jnp.sum(jnp.exp(shifted), axis=-1, keepdims=True))   # (T, 1)

    # Target term without materializing log_probs:
    #   ce = -sum(w * (shifted - lse)) = lse - sum(w * shifted)   (sum(w) == 1)
    class_ids = jax.lax.broadcasted_iota(jnp.int32, x.shape, 1)
    is_target = class_ids == t_col                         # (T, C)
    if label_smoothing > 0.0:
        off = label_smoothing / num_classes
        on = 1.0 - label_smoothing + off
        tgt_term = jnp.sum(jnp.where(is_target, on, off) * shifted,
                           axis=-1, keepdims=True)
    else:
        tgt_term = jnp.sum(jnp.where(is_target, shifted, 0.0),
                           axis=-1, keepdims=True)

    ce = lse - tgt_term                                    # (T, 1)
    pt = jnp.exp(-ce)
    one_minus_pt = 1.0 - pt

    g = float(gamma)
    if g == 0.0:
        focal = ce
    elif g.is_integer() and 0.0 < g <= 8.0:
        # Multiply chain on the VPU instead of jnp.power (log+exp on the EUP).
        mod = one_minus_pt
        for _ in range(int(g) - 1):
            mod = mod * one_minus_pt
        focal = mod * ce
    else:
        focal = jnp.power(one_minus_pt, g) * ce

    # Mask padded rows of the last (partial) tile; also scrubs NaNs from OOB logit rows.
    if n_rows % tile_n != 0:
        row = (pl.program_id(0) * tile_n
               + jax.lax.broadcasted_iota(jnp.int32, (tile_n, 1), 0))
        focal = jnp.where(row < n_rows, focal, 0.0)

    if per_row:
        # Lane-dense per-row output: (T, 1) -> (1, T) via the XLU, unmasked dense store.
        out_ref[0] = jnp.transpose(focal, (1, 0))
    else:
        # Lane-dense per-tile partial sum (whole (1, 8, 128) block, unmasked stores).
        out_ref[...] = jnp.full(out_ref.shape, jnp.sum(focal), dtype=jnp.float32)


def focal_loss(logits, targets, *, gamma=2.0, reduction='mean',
               label_smoothing=0.0, tile_n=None):
    """Pallas TPU FocalLoss forward. logits: (N, C) float (f32 or bf16), targets: (N,) int."""
    if reduction not in ('mean', 'sum', 'none'):
        raise ValueError(f"unsupported reduction: {reduction!r}")

    n, c = logits.shape
    targets = targets.astype(jnp.int32).reshape(n)

    itemsize = jnp.dtype(logits.dtype).itemsize            # 4 (f32) or 2 (bf16/f16)
    row_align = 8 if itemsize >= 4 else 16                  # native sublane packing
    lane_c = _round_up(c, 128)
    vmem_limit = _vmem_limit_bytes()

    if tile_n is None:
        # Per-row VMEM cost: double-buffered logits block (2 * itemsize B/elem; bf16
        # stays 2 B in VMEM) + ~4 live full-tile f32 temporaries inside the kernel.
        bytes_per_row = lane_c * (2 * itemsize + 16)
        cap_rows = max(row_align, (vmem_limit // 2) // bytes_per_row)
        tile_n = min(cap_rows, _round_up(n, row_align))
        if tile_n >= 128:
            tile_n = (tile_n // 128) * 128                  # keep transposes lane-aligned
        if tile_n >= n and n > 256:
            # v7x megacore: keep at least 2 grid steps so both TensorCores get work.
            tile_n = _round_up(pl.cdiv(n, 2), row_align)
    tile_n = max(row_align, _round_up(int(tile_n), row_align))
    num_tiles = pl.cdiv(n, tile_n)
    n_pad = num_tiles * tile_n

    # Lane-dense targets: (num_tiles, 1, tile_n) -> one contiguous row DMA per tile.
    targets_pad = jnp.zeros((n_pad,), jnp.int32).at[:n].set(targets)
    targets_3d = targets_pad.reshape(num_tiles, 1, tile_n)

    per_row = (reduction == 'none')
    kernel = functools.partial(
        _focal_loss_kernel,
        gamma=float(gamma),
        label_smoothing=float(label_smoothing),
        n_rows=n,
        per_row=per_row,
    )

    if per_row:
        out_shape = jax.ShapeDtypeStruct((num_tiles, 1, tile_n), jnp.float32)
        out_spec = pl.BlockSpec((1, 1, tile_n), lambda i: (i, 0, 0))
    else:
        out_shape = jax.ShapeDtypeStruct((num_tiles, 8, 128), jnp.float32)
        out_spec = pl.BlockSpec((1, 8, 128), lambda i: (i, 0, 0))

    out = pl.pallas_call(
        kernel,
        out_shape=out_shape,
        grid_spec=pltpu.PrefetchScalarGridSpec(
            num_scalar_prefetch=0,
            grid=(num_tiles,),
            in_specs=[
                pl.BlockSpec((tile_n, c), lambda i: (i, 0)),        # logits tile
                pl.BlockSpec((1, 1, tile_n), lambda i: (i, 0, 0)),  # targets tile (lane-dense)
            ],
            out_specs=out_spec,
        ),
        compiler_params=pltpu.CompilerParams(
            dimension_semantics=("parallel",),       # v7x: tiles shard across both TCs
            vmem_limit_bytes=vmem_limit,             # generation-aware scoped VMEM
        ),
    )(logits, targets_3d)

    if per_row:
        return out.reshape(-1)[:n]
    total = jnp.sum(out[:, 0, 0])
    if reduction == 'mean':
        return total * (1.0 / n)                     # single exact scale by true N
    return total


def _focal_loss_ref(logits, targets, gamma=2.0, reduction='mean', label_smoothing=0.0):
    """Pure-JAX reference mirroring the PyTorch forward."""
    log_probs = jax.nn.log_softmax(logits.astype(jnp.float32), axis=1)
    _, c = logits.shape
    one_hot = jax.nn.one_hot(targets, c, dtype=jnp.float32)
    if label_smoothing > 0.0:
        one_hot = one_hot * (1.0 - label_smoothing) + label_smoothing / c
    ce = -jnp.sum(one_hot * log_probs, axis=1)
    pt = jnp.exp(-ce)
    focal = (1.0 - pt) ** gamma * ce
    if reduction == 'mean':
        return jnp.mean(focal)
    if reduction == 'sum':
        return jnp.sum(focal)
    return focal


if __name__ == "__main__":
    key = jax.random.PRNGKey(0)
    k_logits, k_tgt, k_logits2, k_tgt2 = jax.random.split(key, 4)

    # 1) Small classification-head shape, single tile, default sizing.
    N, C = 8, 32
    logits = jax.random.normal(k_logits, (N, C), dtype=jnp.float32)
    targets = jax.random.randint(k_tgt, (N,), 0, C, dtype=jnp.int32)
    out = jax.block_until_ready(focal_loss(logits, targets))
    ref = _focal_loss_ref(logits, targets)
    assert jnp.allclose(out, ref, atol=1e-5, rtol=1e-5), (out, ref)

    # 2) Multi-tile path with a masked partial last tile (N % tile_n != 0).
    N2 = 20
    logits2 = jax.random.normal(k_logits2, (N2, C), dtype=jnp.float32)
    targets2 = jax.random.randint(k_tgt2, (N2,), 0, C, dtype=jnp.int32)

    out2 = jax.block_until_ready(focal_loss(logits2, targets2, tile_n=8))
    ref2 = _focal_loss_ref(logits2, targets2)
    assert jnp.allclose(out2, ref2, atol=1e-5, rtol=1e-5), (out2, ref2)

    out3 = jax.block_until_ready(
        focal_loss(logits2, targets2, reduction='sum', label_smoothing=0.1, tile_n=8))
    ref3 = _focal_loss_ref(logits2, targets2, reduction='sum', label_smoothing=0.1)
    assert jnp.allclose(out3, ref3, atol=1e-4, rtol=1e-5), (out3, ref3)

    out4 = jax.block_until_ready(
        focal_loss(logits2, targets2, reduction='none', tile_n=8))
    ref4 = _focal_loss_ref(logits2, targets2, reduction='none')
    assert out4.shape == (N2,)
    assert jnp.allclose(out4, ref4, atol=1e-5, rtol=1e-5), (out4, ref4)

    # 3) Larger batch with default (auto) tiling: lane-aligned tiles + masked tail.
    N3 = 300
    logits3 = jax.random.normal(k_logits, (N3, C), dtype=jnp.float32)
    targets3 = jax.random.randint(k_tgt, (N3,), 0, C, dtype=jnp.int32)
    out5 = jax.block_until_ready(focal_loss(logits3, targets3))
    ref5 = _focal_loss_ref(logits3, targets3)
    assert jnp.allclose(out5, ref5, atol=1e-5, rtol=1e-5), (out5, ref5)

    # 4) bf16 logits path (dtype-aware tiling, 16-row alignment).
    N4, C4 = 32, 48
    logits4 = jax.random.normal(k_logits2, (N4, C4), dtype=jnp.float32).astype(jnp.bfloat16)
    targets4 = jax.random.randint(k_tgt2, (N4,), 0, C4, dtype=jnp.int32)
    out6 = jax.block_until_ready(focal_loss(logits4, targets4))
    ref6 = _focal_loss_ref(logits4, targets4)
    assert jnp.allclose(out6, ref6, atol=1e-4, rtol=1e-4), (out6, ref6)

    print("KERNEL_OK")
</pallas_src>

<mosaic_0001>
module attributes {stable_mosaic.version = 11 : i64} {
  func.func @_focal_loss_kernel(%arg0: i32, %arg1: memref<8x32xf32, #tpu.memory_space<vmem>>, %arg2: memref<1x1x8xi32, #tpu.memory_space<vmem>>, %arg3: memref<1x8x128xf32, #tpu.memory_space<vmem>>) attributes {dimension_semantics = [#tpu.dimension_semantics<parallel>], iteration_bounds = array<i64: 1>, scalar_prefetch = 0 : i64, scratch_operands = 0 : i64, tpu.core_type = #tpu.core_type<tc>, window_params = [{transform_indices = @transform_0, window_bounds = array<i64: 8, 32>}, {transform_indices = @transform_1, window_bounds = array<i64: 1, 1, 8>}, {transform_indices = @transform_2, window_bounds = array<i64: 1, 8, 128>}]} {
    %c0 = arith.constant 0 : index
    %c0_0 = arith.constant 0 : index
    %0 = vector.load %arg1[%c0, %c0_0] : memref<8x32xf32, #tpu.memory_space<vmem>>, vector<8x32xf32>
    %c0_1 = arith.constant 0 : index
    %c0_2 = arith.constant 0 : index
    %c0_3 = arith.constant 0 : index
    %1 = vector.load %arg2[%c0_1, %c0_2, %c0_3] : memref<1x1x8xi32, #tpu.memory_space<vmem>>, vector<1x1x8xi32>
    %2 = vector.shape_cast %1 : vector<1x1x8xi32> to vector<1x8xi32>
    %3 = tpu.transpose %2, [1, 0] : vector<1x8xi32> -> vector<8x1xi32>
    %cst = arith.constant dense<0xFF800000> : vector<8xf32>
    %4 = vector.multi_reduction <maximumf>, %0, %cst [1] : vector<8x32xf32> to vector<8xf32>
    %5 = vector.shape_cast %4 : vector<8xf32> to vector<8x1xf32>
    %6 = vector.broadcast %5 : vector<8x1xf32> to vector<8x32xf32>
    %7 = arith.subf %0, %6 : vector<8x32xf32>
    %8 = math.exp %7 : vector<8x32xf32>
    %cst_4 = arith.constant dense<0.000000e+00> : vector<8xf32>
    %9 = vector.multi_reduction <add>, %8, %cst_4 [1] : vector<8x32xf32> to vector<8xf32>
    %10 = vector.shape_cast %9 : vector<8xf32> to vector<8x1xf32>
    %11 = math.log %10 : vector<8x1xf32>
    %12 = tpu.iota {dimensions = array<i32: 1>} : vector<8x32xi32>
    %13 = vector.broadcast %3 : vector<8x1xi32> to vector<8x32xi32>
    %14 = arith.cmpi eq, %12, %13 : vector<8x32xi32>
    %cst_5 = arith.constant 0.000000e+00 : f32
    %15 = vector.broadcast %cst_5 : f32 to vector<8x32xf32>
    %16 = arith.select %14, %7, %15 : vector<8x32xi1>, vector<8x32xf32>
    %cst_6 = arith.constant dense<0.000000e+00> : vector<8xf32>
    %17 = vector.multi_reduction <add>, %16, %cst_6 [1] : vector<8x32xf32> to vector<8xf32>
    %18 = vector.shape_cast %17 : vector<8xf32> to vector<8x1xf32>
    %19 = arith.subf %11, %18 : vector<8x1xf32>
    %cst_7 = arith.constant 0.000000e+00 : f32
    %20 = vector.broadcast %cst_7 : f32 to vector<8x1xf32>
    %21 = arith.subf %20, %19 : vector<8x1xf32>
    %22 = math.exp %21 : vector<8x1xf32>
    %cst_8 = arith.constant 1.000000e+00 : f32
    %23 = vector.broadcast %cst_8 : f32 to vector<8x1xf32>
    %24 = arith.subf %23, %22 : vector<8x1xf32>
    %25 = arith.mulf %24, %24 : vector<8x1xf32>
    %26 = arith.mulf %25, %19 : vector<8x1xf32>
    %27 = vector.shape_cast %26 : vector<8x1xf32> to vector<1x8x1xf32>
    %cst_9 = arith.constant dense<0.000000e+00> : vector<1xf32>
    %28 = vector.multi_reduction <add>, %27, %cst_9 [1, 2] : vector<1x8x1xf32> to vector<1xf32>
    %29 = vector.shape_cast %28 : vector<1xf32> to vector<1x1x1xf32>
    %30 = vector.extract %29[0, 0, 0] : f32 from vector<1x1x1xf32>
    %31 = vector.broadcast %30 : f32 to vector<1x8x128xf32>
    %c0_10 = arith.constant 0 : index
    %c0_11 = arith.constant 0 : index
    %c0_12 = arith.constant 0 : index
    %32 = vector.load %arg3[%c0_10, %c0_11, %c0_12] : memref<1x8x128xf32, #tpu.memory_space<vmem>>, vector<1x8x128xf32>
    tpu.vector_store %arg3[%c0_10, %c0_11, %c0_12], %31 {strides = array<i32>} : memref<1x8x128xf32, #tpu.memory_space<vmem>>, vector<1x8x128xf32>,
    return
  }
  func.func @transform_0(%arg0: i32) -> (i32, i32) {
    %c0_i32 = arith.constant 0 : i32
    %c0_i32_0 = arith.constant 0 : i32
    return %arg0, %c0_i32 : i32, i32
  }
  func.func @transform_1(%arg0: i32) -> (i32, i32, i32) {
    %c0_i32 = arith.constant 0 : i32
    %c0_i32_0 = arith.constant 0 : i32
    %c0_i32_1 = arith.constant 0 : i32
    return %arg0, %c0_i32, %c0_i32_0 : i32, i32, i32
  }
  func.func @transform_2(%arg0: i32) -> (i32, i32, i32) {
    %c0_i32 = arith.constant 0 : i32
    %c0_i32_0 = arith.constant 0 : i32
    %c0_i32_1 = arith.constant 0 : i32
    return %arg0, %c0_i32, %c0_i32_0 : i32, i32, i32
  }
}

</mosaic_0001>

<bundles_post_ra>
// kernel: tpu_custom_call.1
= control target key start
LH: loop header
LB: loop body
LE: loop exit
PB: predicated region body
PF: predicated region fallthrough
CT: control target
= control target key end

     0   :  { %7 = vsyncpa [#allocation3], 0  ;;  %s224_s0 = inlined_call_operand.hbm [shape: f32[8,32], index: 0, kind: input, shape index: {}]   ;;  %s225_s1 = inlined_call_operand.vmem [shape: s32[1,1,8], index: 1, kind: input, shape index: {}]   ;;  %s226_s2 = inlined_call_operand.hbm [shape: f32[1,8,128], index: 2, kind: output, shape index: {}]  }
   0x1   :  { %8 = vsyncpa [#allocation4], 0  ;;  %s176_s9 = smov [#allocation2]   ;;  %s128_s13 = scalar_lea.hbm %s224_s0, 128 }
   0x2   :  { %s15_s10 = sshll.u32 %s176_s9, 4  ;;  %p129_p0 = scmp.ne.s32.totalorder %s224_s0, %s128_s13  ;;  %s16_s10 = int_to_ptr.vmem [resolvable:$true] %s15_s10 }
   0x3   :  { %p132_p1 = scmp.lt.u32.totalorder %s128_s13, %s224_s0 }
   0x5   :  { %p134_p2 = pnand %p132_p1, %p129_p0 }
   0x7   :  { %137 = shalt.err (!%p134_p2)
}
   0x8   :  { %s138_s18 = scalar_lea.vmem %s16_s10, 128  ;;  %p143_p4 = scmp.lt.s32.totalorder %s16_s10, %s16_s10 }
   0x9   :  { %p139_p3 = scmp.ne.s32.totalorder %s16_s10, %s138_s18  ;;  %p144_p5 = scmp.lt.s32.totalorder %s138_s18, %s138_s18 }
   0xb   :  { %p145_p6 = por %p144_p5, %p143_p4 }
   0xd   :  { %p146_p7 = pnand %p145_p6, %p139_p3 }
   0xf   :  { %149 = shalt.err (!%p146_p7)
}
  0x10   :  { %18 = dma.hbm_to_vmem [thread:$0]  %s224_s0, 128, %s16_s10, [#allocation3]  }
  0x11   :  { %172 = dma.done.wait [#allocation3], 128  }
  0x12   :  { %173 = vsyncadd [#allocation3], 4294967168  ;;  %v177_v0 = vmov 0   ;;  %v25_v1 = vld [vmem:[%s225_s1] sm:$0x1]  ;;  %vm58_vm0 = vcmask 261120   ;;  %v70_v10 = vlaneseq }
  0x13   :  { %120 = vset.pattern.permute.xlu1 %v177_v0  ;;  %26 = vxpose.xlu0.b32.start.end [1/1] (short) (narrow) %v25_v1, 8  ;;  %v24_v2 = vld [vmem:[#allocation2] sm:$0xff]  ;;  %vm87_vm2 = vcmask 7168   ;;  %s178_s0 = smov [#allocation5]  }
  0x14   :  { %v59_v3 = vsel %vm58_vm0, %v24_v2, -inf  ;;  %v71_v11 = vand.u32 127, %v70_v10  ;;  %s106_s1 = sshll.u32 %s178_s0, 4  ;;  %s107_s1 = int_to_ptr.vmem [resolvable:$true] %s106_s1 }
  0x15   :  { %s150_s24 = scalar_lea.vmem %s107_s1, 128  ;;  %p155_p9 = scmp.lt.s32.totalorder %s107_s1, %s107_s1 }
  0x16   :  { %p151_p8 = scmp.ne.s32.totalorder %s107_s1, %s150_s24  ;;  %p156_p10 = scmp.lt.s32.totalorder %s150_s24, %s150_s24 }
  0x18   :  { %p157_p11 = por %p156_p10, %p155_p9 }
  0x1a   :  { %p158_p12 = pnand %p157_p11, %p151_p8 }
  0x3c   :  { %121 = vset.pattern.permute.xlu0 %v177_v0 }
  0x40   :  { %60 = vmax.xlane.f32.xlu0 %v59_v3 }
  0x93   :  { %v42_v4 = vpop.trf.xlu0 }
  0x94   :  { %73 = vperm.xlu1 %120, %v42_v4  }
  0xcd   :  { %v61_v5 = vpop.xlane.xlu0 %60 }
  0xce   :  { %v62_v6 = vsub.f32 %v24_v2, %v61_v5 }
  0xd0   :  { %v63_v7 = vmul.f32 1.442695, %v62_v6 }
  0xd2   :  { %122 = vpow2.f32 %v63_v7 }
  0xdc   :  { %v123_v8 = vpop.eup %122 }
  0xdd   :  { %v65_v9 = vsel %vm58_vm0, %v123_v8, 0.0 }
  0xde   :  { %66 = vadd.xlane.f32.xlu1 %v65_v9 }
 0x113   :  { %v74_v12 = vpop.permute.xlu1 %73 }
 0x114   :  { %vm75_vm1 = vcmp.eq.s32.totalorder %v71_v11, %v74_v12 }
 0x115   :  { %v76_v13 = vsel %vm75_vm1, %v62_v6, 0.0 }
 0x116   :  { %v77_v14 = vsel %vm58_vm0, %v76_v13, 0.0 }
 0x117   :  { %78 = vadd.xlane.f32.xlu1 %v77_v14 }
 0x16b   :  { %v67_v15 = vpop.xlane.xlu1 %66 }
 0x16c   :  { %124 = vlog2.f32 %v67_v15 }
 0x176   :  { %v125_v16 = vpop.eup %124 }
 0x177   :  { %v69_v17 = vmul.f32 0.6931472, %v125_v16 }
 0x1a4   :  { %v79_v18 = vpop.xlane.xlu1 %78 }
 0x1a5   :  { %v80_v19 = vsub.f32 %v69_v17, %v79_v18 }
 0x1a7   :  { %v81_v20 = vsub.f32 0.0, %v80_v19 }
 0x1a9   :  { %v82_v21 = vmul.f32 1.442695, %v81_v20 }
 0x1ab   :  { %126 = vpow2.f32 %v82_v21 }
 0x1b5   :  { %v127_v22 = vpop.eup %126 }
 0x1b6   :  { %v84_v23 = vsub.f32 1.0, %v127_v22 }
 0x1b8   :  { %v85_v24 = vmul.f32 %v84_v23, %v84_v23 }
 0x1ba   :  { %v86_v25 = vmul.f32 %v85_v24, %v80_v19 }
 0x1bc   :  { %v88_v26 = vsel %vm87_vm2, %v86_v25, 0.0 }
 0x1bd   :  { %89 = vadd.xlane.f32.xlu1 %v88_v26 }
 0x24a   :  { %v90_v27 = vpop.xlane.xlu1 %89 }
 0x24b   :  { %v91_v28 = vrot.slane %v90_v27, 4 }
 0x24d   :  { %v92_v29 = vadd.f32 %v91_v28, %v90_v27 }
 0x24f   :  { %v93_v30 = vrot.slane %v92_v29, 2 }
 0x251   :  { %v94_v31 = vadd.f32 %v93_v30, %v92_v29 }
 0x253   :  { %v95_v32 = vrot.slane %v94_v31, 1 }
 0x255   :  { %v96_v33 = vadd.f32 %v95_v32, %v94_v31 }
 0x257   :  { %115 = vpush %v96_v33 }
 0x288   :  { %s116_s23 = spop %115 }
 0x289   :  { %v98_v34 = vstv %s116_s23 }
 0x28a   :  { %99 = vst [vmem:[#allocation5] sm:$0xff] %v98_v34 }
 0x28b   :  { %161 = shalt.err (!%p158_p12)
}
 0x28c   :  { %s162_s27 = scalar_lea.hbm %s226_s2, 128 }
 0x28d   :  { %p163_p13 = scmp.ne.s32.totalorder %s226_s2, %s162_s27  ;;  %p166_p0 = scmp.lt.u32.totalorder %s162_s27, %s226_s2 }
 0x28f   :  { %p168_p1 = pnand %p166_p0, %p163_p13 }
 0x291   :  { %171 = shalt.err (!%p168_p1)
}
 0x292   :  { %109 = dma.vmem_to_hbm [thread:$0]  %s107_s1, 128, %s226_s2, [#allocation4]  }
 0x293   :  { %174 = dma.done.wait [#allocation4], 128  }
 0x294   :  { %175 = vsyncadd [#allocation4], 4294967168 }
 0x295   :  { %113 = vsyncpa [#allocation3], 1 }
 0x296   :  { %114 = vsyncpa [#allocation4], 1 }

</bundles_post_ra>
